<compile_context>
chip_gen: v7x
topology: tpu7x:2x2x1
jax: 0.10.0
libtpu: 0.0.40
codegen_flags: <defaults>
</compile_context>

<pallas_src>
import functools

import jax
import jax.numpy as jnp
from jax.experimental import pallas as pl
from jax.experimental.pallas import tpu as pltpu

_LANE = 128        # TPU lane width (last dim)
_SUBLANE = 8       # TPU sublane count (second-last dim)
_NEG_SLOPE = 0.01  # nn.LeakyReLU default negative_slope


def _round_up(x, m):
    return (x + m - 1) // m * m


# --------------------------------------------------------------------------
# Kernel: whole MLP for one batch tile.  Weights are bf16, biases f32,
# accumulation f32 (preferred_element_type).  All feature dims are padded to
# multiples of 128 in the wrapper; padded lanes stay exactly zero through
# matmul, bias add and LeakyReLU.
# --------------------------------------------------------------------------
def _fused_mlp_kernel(*refs, acts, negative_slope):
    # refs = (x_ref, w0, b0, w1, b1, ..., o_ref)
    #   x_ref : (TB, D0_pad)       bf16
    #   wL    : (DL_pad, DL1_pad)  bf16 (transposed wrt PyTorch (out, in))
    #   bL    : (1, DL1_pad)       f32
    #   o_ref : (TB, Dlast_pad)    f32
    x_ref = refs[0]
    o_ref = refs[-1]
    wb = refs[1:-1]

    h = x_ref[...]
    for li, act in enumerate(acts):
        w = wb[2 * li][...]            # bf16 weights (VMEM-resident)
        b = wb[2 * li + 1][...]        # f32 bias, (1, D) broadcast over batch
        h = jnp.dot(h.astype(jnp.bfloat16), w,
                    preferred_element_type=jnp.float32) + b
        if act:
            # LeakyReLU; maximum form valid for 0 < slope < 1.
            h = jnp.maximum(h, negative_slope * h)
    o_ref[...] = h.astype(o_ref.dtype)


# --------------------------------------------------------------------------
# One-time parameter preparation (layout plumbing hoisted out of the forward).
# --------------------------------------------------------------------------
def prepare_classifier_params(params):
    """Pad feature dims to multiples of 128 and cast weights to bf16 (once).

    params : list of (W_transposed (Din, Dout) f32, bias (Dout,) f32,
                      has_leaky_relu_after)
    """
    dims = [params[0][0].shape[0]] + [w.shape[1] for (w, _, _) in params]
    pdims = [_round_up(d, _LANE) for d in dims]

    weights, biases = [], []
    for li, (w_t, b, _) in enumerate(params):
        din, dout = w_t.shape
        w_p = jnp.pad(w_t.astype(jnp.float32),
                      ((0, pdims[li] - din), (0, pdims[li + 1] - dout)))
        weights.append(w_p.astype(jnp.bfloat16))
        biases.append(jnp.pad(b.astype(jnp.float32).reshape(1, -1),
                              ((0, 0), (0, pdims[li + 1] - dout))))
    acts = tuple(a for (_, _, a) in params)
    return dict(weights=weights, biases=biases, acts=acts,
                dims=dims, pdims=pdims, d_out=dims[-1])


# --------------------------------------------------------------------------
# Forward pass: one fused pallas_call over a batch-only grid.
# --------------------------------------------------------------------------
def classifier_forward(x, prepared, *, batch_tile=256):
    """x : (B, input_size) f32 -> (B, output_size) f32."""
    B, d_in = x.shape
    dims, pdims = prepared["dims"], prepared["pdims"]
    assert d_in == dims[0], f"expected input_size={dims[0]}, got {d_in}"
    ws, bs, acts = prepared["weights"], prepared["biases"], prepared["acts"]
    d_out = prepared["d_out"]

    # Batch: pad only to a sublane multiple; partial last tile handled by grid.
    b_pad = _round_up(B, _SUBLANE)
    tb = min(_round_up(batch_tile, _SUBLANE), b_pad)
    grid_b = pl.cdiv(b_pad, tb)

    # Input: pad rows/lanes with zeros, cast to bf16 once (halves input DMA).
    x_p = jnp.pad(x.astype(jnp.float32),
                  ((0, b_pad - B), (0, pdims[0] - d_in))).astype(jnp.bfloat16)

    flat_inputs = [x_p]
    for w_p, b_p in zip(ws, bs):
        flat_inputs += [w_p, b_p]

    kernel = functools.partial(
        _fused_mlp_kernel, acts=acts, negative_slope=_NEG_SLOPE)

    # Advisory cost estimate so XLA schedules the pad/slice around the call.
    flops = 2 * grid_b * tb * sum(pdims[i] * pdims[i + 1]
                                  for i in range(len(pdims) - 1))
    bytes_accessed = (x_p.size * 2
                      + sum(int(w.size) * 2 for w in ws)
                      + sum(int(b.size) * 4 for b in bs)
                      + b_pad * pdims[-1] * 4)
    cost = pl.CostEstimate(flops=int(flops), transcendentals=0,
                           bytes_accessed=int(bytes_accessed))

    def _build_and_call(single_buffer_weights):
        # Weights/biases: constant index_map -> stay VMEM-resident across the
        # batch grid; single-buffer them (double-buffering is pure VMEM waste).
        w_kwargs = ({"pipeline_mode": pl.Buffered(1)}
                    if single_buffer_weights else {})
        in_specs = [pl.BlockSpec((tb, pdims[0]), lambda i: (i, 0))]
        for w_p, b_p in zip(ws, bs):
            in_specs.append(pl.BlockSpec(w_p.shape, lambda i: (0, 0), **w_kwargs))
            in_specs.append(pl.BlockSpec(b_p.shape, lambda i: (0, 0), **w_kwargs))
        out_spec = pl.BlockSpec((tb, pdims[-1]), lambda i: (i, 0))

        # Explicit VMEM budget -> vmem_limit_bytes.
        w_factor = 1 if single_buffer_weights else 2
        weight_bytes = sum(int(w.size) * 2 for w in ws) * w_factor
        bias_bytes = sum(int(b.size) * 4 for b in bs) * w_factor
        io_bytes = 2 * tb * pdims[0] * 2 + 2 * tb * pdims[-1] * 4  # dbl-buffered
        act_bytes = 3 * tb * max(pdims) * 4                        # h headroom
        budget = weight_bytes + bias_bytes + io_bytes + act_bytes + (2 << 20)
        vmem_limit = int(min(max(budget, 16 << 20), 100 << 20))

        return pl.pallas_call(
            kernel,
            out_shape=jax.ShapeDtypeStruct((b_pad, pdims[-1]), jnp.float32),
            grid=(grid_b,),
            in_specs=in_specs,
            out_specs=out_spec,
            compiler_params=pltpu.CompilerParams(
                dimension_semantics=("parallel",),
                vmem_limit_bytes=vmem_limit),
            cost_estimate=cost,
        )(*flat_inputs)

    try:
        out_p = _build_and_call(True)
    except Exception:
        # Fallback if this JAX build rejects Buffered(1) on resident operands.
        out_p = _build_and_call(False)

    return out_p[:B, :d_out]


# --------------------------------------------------------------------------
# Synthetic parameters matching the PyTorch layer shapes, plus references.
# --------------------------------------------------------------------------
def init_classifier_params(key, input_size, output_size, hidden_layers):
    """Returns list of (W_transposed (Din, Dout), bias (Dout,), leaky_after)."""
    first = 64
    dims = [input_size, first]
    for i in range(hidden_layers):
        dims.append(2 ** (i + 1) * first)
    dims.append(output_size)
    acts = [False] + [True] * hidden_layers + [False]

    params = []
    for li in range(len(dims) - 1):
        din, dout = dims[li], dims[li + 1]
        key, kw, kb = jax.random.split(key, 3)
        bound = float(din) ** -0.5  # PyTorch-style uniform init bound
        w_t = jax.random.uniform(kw, (din, dout), jnp.float32, -bound, bound)
        b = jax.random.uniform(kb, (dout,), jnp.float32, -bound, bound)
        params.append((w_t, b, acts[li]))
    return params


def classifier_forward_ref_f32(x, params):
    """Pure-f32 reference (PyTorch semantics)."""
    h = x
    for w_t, b, act in params:
        h = h @ w_t + b
        if act:
            h = jnp.where(h >= 0.0, h, _NEG_SLOPE * h)
    return h


def classifier_forward_ref_bf16(x, params):
    """bf16-matmul / f32-accumulate reference (matches the kernel's math)."""
    h = x.astype(jnp.float32)
    for w_t, b, act in params:
        h = jnp.dot(h.astype(jnp.bfloat16), w_t.astype(jnp.bfloat16),
                    preferred_element_type=jnp.float32) + b.astype(jnp.float32)
        if act:
            h = jnp.maximum(h, _NEG_SLOPE * h)
    return h


if __name__ == "__main__":
    input_size = 32
    output_size = 8
    hidden_layers = 2
    batch = 2

    key = jax.random.PRNGKey(0)
    key_x, key_p = jax.random.split(key)

    x = jax.random.normal(key_x, (batch, input_size), jnp.float32)
    params = init_classifier_params(key_p, input_size, output_size, hidden_layers)

    prepared = prepare_classifier_params(params)          # one-time prep
    out = jax.block_until_ready(classifier_forward(x, prepared))

    ref_bf16 = classifier_forward_ref_bf16(x, params)     # apples-to-apples
    ref_f32 = classifier_forward_ref_f32(x, params)       # module semantics

    assert out.shape == (batch, output_size)
    assert jnp.allclose(out, ref_bf16, atol=2e-3, rtol=2e-3), \
        "Pallas output mismatch vs bf16-matched reference"
    assert jnp.allclose(out, ref_f32, atol=5e-2, rtol=5e-2), \
        "Pallas output mismatch vs f32 reference"

    print("KERNEL_OK")
</pallas_src>

<mosaic_0001>
module attributes {stable_mosaic.version = 11 : i64} {
  func.func @_fused_mlp_kernel(%arg0: i32, %arg1: memref<8x128xbf16, #tpu.memory_space<vmem>>, %arg2: memref<128x128xbf16, #tpu.memory_space<vmem>>, %arg3: memref<1x128xf32, #tpu.memory_space<vmem>>, %arg4: memref<128x128xbf16, #tpu.memory_space<vmem>>, %arg5: memref<1x128xf32, #tpu.memory_space<vmem>>, %arg6: memref<128x256xbf16, #tpu.memory_space<vmem>>, %arg7: memref<1x256xf32, #tpu.memory_space<vmem>>, %arg8: memref<256x128xbf16, #tpu.memory_space<vmem>>, %arg9: memref<1x128xf32, #tpu.memory_space<vmem>>, %arg10: memref<8x128xf32, #tpu.memory_space<vmem>>) attributes {dimension_semantics = [#tpu.dimension_semantics<parallel>], iteration_bounds = array<i64: 1>, scalar_prefetch = 0 : i64, scratch_operands = 0 : i64, tpu.core_type = #tpu.core_type<tc>, window_params = [{transform_indices = @transform_0, window_bounds = array<i64: 8, 128>}, {pipeline_mode = #tpu.pipeline_mode<synchronous>, transform_indices = @transform_1, window_bounds = array<i64: 128, 128>}, {pipeline_mode = #tpu.pipeline_mode<synchronous>, transform_indices = @transform_2, window_bounds = array<i64: 1, 128>}, {pipeline_mode = #tpu.pipeline_mode<synchronous>, transform_indices = @transform_3, window_bounds = array<i64: 128, 128>}, {pipeline_mode = #tpu.pipeline_mode<synchronous>, transform_indices = @transform_4, window_bounds = array<i64: 1, 128>}, {pipeline_mode = #tpu.pipeline_mode<synchronous>, transform_indices = @transform_5, window_bounds = array<i64: 128, 256>}, {pipeline_mode = #tpu.pipeline_mode<synchronous>, transform_indices = @transform_6, window_bounds = array<i64: 1, 256>}, {pipeline_mode = #tpu.pipeline_mode<synchronous>, transform_indices = @transform_7, window_bounds = array<i64: 256, 128>}, {pipeline_mode = #tpu.pipeline_mode<synchronous>, transform_indices = @transform_8, window_bounds = array<i64: 1, 128>}, {transform_indices = @transform_9, window_bounds = array<i64: 8, 128>}]} {
    %c0 = arith.constant 0 : index
    %c0_0 = arith.constant 0 : index
    %0 = vector.load %arg1[%c0, %c0_0] : memref<8x128xbf16, #tpu.memory_space<vmem>>, vector<8x128xbf16>
    %c0_1 = arith.constant 0 : index
    %c0_2 = arith.constant 0 : index
    %1 = vector.load %arg2[%c0_1, %c0_2] : memref<128x128xbf16, #tpu.memory_space<vmem>>, vector<128x128xbf16>
    %c0_3 = arith.constant 0 : index
    %c0_4 = arith.constant 0 : index
    %2 = vector.load %arg3[%c0_3, %c0_4] : memref<1x128xf32, #tpu.memory_space<vmem>>, vector<1x128xf32>
    %cst = arith.constant dense<0.000000e+00> : vector<8x128xf32>
    %3 = tpu.matmul %0, %1, %cst {dimension_numbers = #tpu.dot_dimension_numbers<[1], [0], [0], [1], [0, 0, 1, 1], [], []>} : vector<8x128xbf16>, vector<128x128xbf16>, vector<8x128xf32> -> vector<8x128xf32>
    %4 = vector.broadcast %2 : vector<1x128xf32> to vector<8x128xf32>
    %5 = arith.addf %3, %4 : vector<8x128xf32>
    %c0_5 = arith.constant 0 : index
    %c0_6 = arith.constant 0 : index
    %6 = vector.load %arg4[%c0_5, %c0_6] : memref<128x128xbf16, #tpu.memory_space<vmem>>, vector<128x128xbf16>
    %c0_7 = arith.constant 0 : index
    %c0_8 = arith.constant 0 : index
    %7 = vector.load %arg5[%c0_7, %c0_8] : memref<1x128xf32, #tpu.memory_space<vmem>>, vector<1x128xf32>
    %8 = arith.truncf %5 : vector<8x128xf32> to vector<8x128xbf16>
    %cst_9 = arith.constant dense<0.000000e+00> : vector<8x128xf32>
    %9 = tpu.matmul %8, %6, %cst_9 {dimension_numbers = #tpu.dot_dimension_numbers<[1], [0], [0], [1], [0, 0, 1, 1], [], []>} : vector<8x128xbf16>, vector<128x128xbf16>, vector<8x128xf32> -> vector<8x128xf32>
    %10 = vector.broadcast %7 : vector<1x128xf32> to vector<8x128xf32>
    %11 = arith.addf %9, %10 : vector<8x128xf32>
    %cst_10 = arith.constant 0.00999999977 : f32
    %12 = vector.broadcast %cst_10 : f32 to vector<8x128xf32>
    %13 = arith.mulf %12, %11 : vector<8x128xf32>
    %14 = arith.maximumf %11, %13 : vector<8x128xf32>
    %c0_11 = arith.constant 0 : index
    %c0_12 = arith.constant 0 : index
    %15 = vector.load %arg6[%c0_11, %c0_12] : memref<128x256xbf16, #tpu.memory_space<vmem>>, vector<128x256xbf16>
    %c0_13 = arith.constant 0 : index
    %c0_14 = arith.constant 0 : index
    %16 = vector.load %arg7[%c0_13, %c0_14] : memref<1x256xf32, #tpu.memory_space<vmem>>, vector<1x256xf32>
    %17 = arith.truncf %14 : vector<8x128xf32> to vector<8x128xbf16>
    %cst_15 = arith.constant dense<0.000000e+00> : vector<8x256xf32>
    %18 = tpu.matmul %17, %15, %cst_15 {dimension_numbers = #tpu.dot_dimension_numbers<[1], [0], [0], [1], [0, 0, 1, 1], [], []>} : vector<8x128xbf16>, vector<128x256xbf16>, vector<8x256xf32> -> vector<8x256xf32>
    %19 = vector.broadcast %16 : vector<1x256xf32> to vector<8x256xf32>
    %20 = arith.addf %18, %19 : vector<8x256xf32>
    %cst_16 = arith.constant 0.00999999977 : f32
    %21 = vector.broadcast %cst_16 : f32 to vector<8x256xf32>
    %22 = arith.mulf %21, %20 : vector<8x256xf32>
    %23 = arith.maximumf %20, %22 : vector<8x256xf32>
    %c0_17 = arith.constant 0 : index
    %c0_18 = arith.constant 0 : index
    %24 = vector.load %arg8[%c0_17, %c0_18] : memref<256x128xbf16, #tpu.memory_space<vmem>>, vector<256x128xbf16>
    %c0_19 = arith.constant 0 : index
    %c0_20 = arith.constant 0 : index
    %25 = vector.load %arg9[%c0_19, %c0_20] : memref<1x128xf32, #tpu.memory_space<vmem>>, vector<1x128xf32>
    %26 = arith.truncf %23 : vector<8x256xf32> to vector<8x256xbf16>
    %cst_21 = arith.constant dense<0.000000e+00> : vector<8x128xf32>
    %27 = tpu.matmul %26, %24, %cst_21 {dimension_numbers = #tpu.dot_dimension_numbers<[1], [0], [0], [1], [0, 0, 1, 1], [], []>} : vector<8x256xbf16>, vector<256x128xbf16>, vector<8x128xf32> -> vector<8x128xf32>
    %28 = vector.broadcast %25 : vector<1x128xf32> to vector<8x128xf32>
    %29 = arith.addf %27, %28 : vector<8x128xf32>
    %c0_22 = arith.constant 0 : index
    %c0_23 = arith.constant 0 : index
    %30 = vector.load %arg10[%c0_22, %c0_23] : memref<8x128xf32, #tpu.memory_space<vmem>>, vector<8x128xf32>
    tpu.vector_store %arg10[%c0_22, %c0_23], %29 {strides = array<i32>} : memref<8x128xf32, #tpu.memory_space<vmem>>, vector<8x128xf32>,
    return
  }
  func.func @transform_0(%arg0: i32) -> (i32, i32) {
    %c0_i32 = arith.constant 0 : i32
    %c0_i32_0 = arith.constant 0 : i32
    return %arg0, %c0_i32 : i32, i32
  }
  func.func @transform_1(%arg0: i32) -> (i32, i32) {
    %c0_i32 = arith.constant 0 : i32
    %c0_i32_0 = arith.constant 0 : i32
    %c0_i32_1 = arith.constant 0 : i32
    return %c0_i32, %c0_i32_0 : i32, i32
  }
  func.func @transform_2(%arg0: i32) -> (i32, i32) {
    %c0_i32 = arith.constant 0 : i32
    %c0_i32_0 = arith.constant 0 : i32
    %c0_i32_1 = arith.constant 0 : i32
    return %c0_i32, %c0_i32_0 : i32, i32
  }
  func.func @transform_3(%arg0: i32) -> (i32, i32) {
    %c0_i32 = arith.constant 0 : i32
    %c0_i32_0 = arith.constant 0 : i32
    %c0_i32_1 = arith.constant 0 : i32
    return %c0_i32, %c0_i32_0 : i32, i32
  }
  func.func @transform_4(%arg0: i32) -> (i32, i32) {
    %c0_i32 = arith.constant 0 : i32
    %c0_i32_0 = arith.constant 0 : i32
    %c0_i32_1 = arith.constant 0 : i32
    return %c0_i32, %c0_i32_0 : i32, i32
  }
  func.func @transform_5(%arg0: i32) -> (i32, i32) {
    %c0_i32 = arith.constant 0 : i32
    %c0_i32_0 = arith.constant 0 : i32
    %c0_i32_1 = arith.constant 0 : i32
    return %c0_i32, %c0_i32_0 : i32, i32
  }
  func.func @transform_6(%arg0: i32) -> (i32, i32) {
    %c0_i32 = arith.constant 0 : i32
    %c0_i32_0 = arith.constant 0 : i32
    %c0_i32_1 = arith.constant 0 : i32
    return %c0_i32, %c0_i32_0 : i32, i32
  }
  func.func @transform_7(%arg0: i32) -> (i32, i32) {
    %c0_i32 = arith.constant 0 : i32
    %c0_i32_0 = arith.constant 0 : i32
    %c0_i32_1 = arith.constant 0 : i32
    return %c0_i32, %c0_i32_0 : i32, i32
  }
  func.func @transform_8(%arg0: i32) -> (i32, i32) {
    %c0_i32 = arith.constant 0 : i32
    %c0_i32_0 = arith.constant 0 : i32
    %c0_i32_1 = arith.constant 0 : i32
    return %c0_i32, %c0_i32_0 : i32, i32
  }
  func.func @transform_9(%arg0: i32) -> (i32, i32) {
    %c0_i32 = arith.constant 0 : i32
    %c0_i32_0 = arith.constant 0 : i32
    return %arg0, %c0_i32 : i32, i32
  }
}

module attributes {stable_mosaic.version = 11 : i64} {
  func.func @_fused_mlp_kernel(%arg0: i32, %arg1: memref<8x128xbf16, #tpu.memory_space<vmem>>, %arg2: memref<128x128xbf16, #tpu.memory_space<vmem>>, %arg3: memref<1x128xf32, #tpu.memory_space<vmem>>, %arg4: memref<128x128xbf16, #tpu.memory_space<vmem>>, %arg5: memref<1x128xf32, #tpu.memory_space<vmem>>, %arg6: memref<128x256xbf16, #tpu.memory_space<vmem>>, %arg7: memref<1x256xf32, #tpu.memory_space<vmem>>, %arg8: memref<256x128xbf16, #tpu.memory_space<vmem>>, %arg9: memref<1x128xf32, #tpu.memory_space<vmem>>, %arg10: memref<8x128xf32, #tpu.memory_space<vmem>>) attributes {dimension_semantics = [#tpu.dimension_semantics<parallel>], iteration_bounds = array<i64: 1>, scalar_prefetch = 0 : i64, scratch_operands = 0 : i64, tpu.core_type = #tpu.core_type<tc>, window_params = [{transform_indices = @transform_0, window_bounds = array<i64: 8, 128>}, {pipeline_mode = #tpu.pipeline_mode<synchronous>, transform_indices = @transform_1, window_bounds = array<i64: 128, 128>}, {pipeline_mode = #tpu.pipeline_mode<synchronous>, transform_indices = @transform_2, window_bounds = array<i64: 1, 128>}, {pipeline_mode = #tpu.pipeline_mode<synchronous>, transform_indices = @transform_3, window_bounds = array<i64: 128, 128>}, {pipeline_mode = #tpu.pipeline_mode<synchronous>, transform_indices = @transform_4, window_bounds = array<i64: 1, 128>}, {pipeline_mode = #tpu.pipeline_mode<synchronous>, transform_indices = @transform_5, window_bounds = array<i64: 128, 256>}, {pipeline_mode = #tpu.pipeline_mode<synchronous>, transform_indices = @transform_6, window_bounds = array<i64: 1, 256>}, {pipeline_mode = #tpu.pipeline_mode<synchronous>, transform_indices = @transform_7, window_bounds = array<i64: 256, 128>}, {pipeline_mode = #tpu.pipeline_mode<synchronous>, transform_indices = @transform_8, window_bounds = array<i64: 1, 128>}, {transform_indices = @transform_9, window_bounds = array<i64: 8, 128>}]} {
    %c0 = arith.constant 0 : index
    %c0_0 = arith.constant 0 : index
    %0 = vector.load %arg1[%c0, %c0_0] : memref<8x128xbf16, #tpu.memory_space<vmem>>, vector<8x128xbf16>
    %c0_1 = arith.constant 0 : index
    %c0_2 = arith.constant 0 : index
    %1 = vector.load %arg2[%c0_1, %c0_2] : memref<128x128xbf16, #tpu.memory_space<vmem>>, vector<128x128xbf16>
    %c0_3 = arith.constant 0 : index
    %c0_4 = arith.constant 0 : index
    %2 = vector.load %arg3[%c0_3, %c0_4] : memref<1x128xf32, #tpu.memory_space<vmem>>, vector<1x128xf32>
    %cst = arith.constant dense<0.000000e+00> : vector<8x128xf32>
    %3 = tpu.matmul %0, %1, %cst {dimension_numbers = #tpu.dot_dimension_numbers<[1], [0], [0], [1], [0, 0, 1, 1], [], []>} : vector<8x128xbf16>, vector<128x128xbf16>, vector<8x128xf32> -> vector<8x128xf32>
    %4 = vector.broadcast %2 : vector<1x128xf32> to vector<8x128xf32>
    %5 = arith.addf %3, %4 : vector<8x128xf32>
    %c0_5 = arith.constant 0 : index
    %c0_6 = arith.constant 0 : index
    %6 = vector.load %arg4[%c0_5, %c0_6] : memref<128x128xbf16, #tpu.memory_space<vmem>>, vector<128x128xbf16>
    %c0_7 = arith.constant 0 : index
    %c0_8 = arith.constant 0 : index
    %7 = vector.load %arg5[%c0_7, %c0_8] : memref<1x128xf32, #tpu.memory_space<vmem>>, vector<1x128xf32>
    %8 = arith.truncf %5 : vector<8x128xf32> to vector<8x128xbf16>
    %cst_9 = arith.constant dense<0.000000e+00> : vector<8x128xf32>
    %9 = tpu.matmul %8, %6, %cst_9 {dimension_numbers = #tpu.dot_dimension_numbers<[1], [0], [0], [1], [0, 0, 1, 1], [], []>} : vector<8x128xbf16>, vector<128x128xbf16>, vector<8x128xf32> -> vector<8x128xf32>
    %10 = vector.broadcast %7 : vector<1x128xf32> to vector<8x128xf32>
    %11 = arith.addf %9, %10 : vector<8x128xf32>
    %cst_10 = arith.constant 0.00999999977 : f32
    %12 = vector.broadcast %cst_10 : f32 to vector<8x128xf32>
    %13 = arith.mulf %12, %11 : vector<8x128xf32>
    %14 = arith.maximumf %11, %13 : vector<8x128xf32>
    %c0_11 = arith.constant 0 : index
    %c0_12 = arith.constant 0 : index
    %15 = vector.load %arg6[%c0_11, %c0_12] : memref<128x256xbf16, #tpu.memory_space<vmem>>, vector<128x256xbf16>
    %c0_13 = arith.constant 0 : index
    %c0_14 = arith.constant 0 : index
    %16 = vector.load %arg7[%c0_13, %c0_14] : memref<1x256xf32, #tpu.memory_space<vmem>>, vector<1x256xf32>
    %17 = arith.truncf %14 : vector<8x128xf32> to vector<8x128xbf16>
    %cst_15 = arith.constant dense<0.000000e+00> : vector<8x256xf32>
    %18 = tpu.matmul %17, %15, %cst_15 {dimension_numbers = #tpu.dot_dimension_numbers<[1], [0], [0], [1], [0, 0, 1, 1], [], []>} : vector<8x128xbf16>, vector<128x256xbf16>, vector<8x256xf32> -> vector<8x256xf32>
    %19 = vector.broadcast %16 : vector<1x256xf32> to vector<8x256xf32>
    %20 = arith.addf %18, %19 : vector<8x256xf32>
    %cst_16 = arith.constant 0.00999999977 : f32
    %21 = vector.broadcast %cst_16 : f32 to vector<8x256xf32>
    %22 = arith.mulf %21, %20 : vector<8x256xf32>
    %23 = arith.maximumf %20, %22 : vector<8x256xf32>
    %c0_17 = arith.constant 0 : index
    %c0_18 = arith.constant 0 : index
    %24 = vector.load %arg8[%c0_17, %c0_18] : memref<256x128xbf16, #tpu.memory_space<vmem>>, vector<256x128xbf16>
    %c0_19 = arith.constant 0 : index
    %c0_20 = arith.constant 0 : index
    %25 = vector.load %arg9[%c0_19, %c0_20] : memref<1x128xf32, #tpu.memory_space<vmem>>, vector<1x128xf32>
    %26 = arith.truncf %23 : vector<8x256xf32> to vector<8x256xbf16>
    %cst_21 = arith.constant dense<0.000000e+00> : vector<8x128xf32>
    %27 = tpu.matmul %26, %24, %cst_21 {dimension_numbers = #tpu.dot_dimension_numbers<[1], [0], [0], [1], [0, 0, 1, 1], [], []>} : vector<8x256xbf16>, vector<256x128xbf16>, vector<8x128xf32> -> vector<8x128xf32>
    %28 = vector.broadcast %25 : vector<1x128xf32> to vector<8x128xf32>
    %29 = arith.addf %27, %28 : vector<8x128xf32>
    %c0_22 = arith.constant 0 : index
    %c0_23 = arith.constant 0 : index
    %30 = vector.load %arg10[%c0_22, %c0_23] : memref<8x128xf32, #tpu.memory_space<vmem>>, vector<8x128xf32>
    tpu.vector_store %arg10[%c0_22, %c0_23], %29 {strides = array<i32>} : memref<8x128xf32, #tpu.memory_space<vmem>>, vector<8x128xf32>,
    return
  }
  func.func @transform_0(%arg0: i32) -> (i32, i32) {
    %c0_i32 = arith.constant 0 : i32
    %c0_i32_0 = arith.constant 0 : i32
    return %arg0, %c0_i32 : i32, i32
  }
  func.func @transform_1(%arg0: i32) -> (i32, i32) {
    %c0_i32 = arith.constant 0 : i32
    %c0_i32_0 = arith.constant 0 : i32
    %c0_i32_1 = arith.constant 0 : i32
    return %c0_i32, %c0_i32_0 : i32, i32
  }
  func.func @transform_2(%arg0: i32) -> (i32, i32) {
    %c0_i32 = arith.constant 0 : i32
    %c0_i32_0 = arith.constant 0 : i32
    %c0_i32_1 = arith.constant 0 : i32
    return %c0_i32, %c0_i32_0 : i32, i32
  }
  func.func @transform_3(%arg0: i32) -> (i32, i32) {
    %c0_i32 = arith.constant 0 : i32
    %c0_i32_0 = arith.constant 0 : i32
    %c0_i32_1 = arith.constant 0 : i32
    return %c0_i32, %c0_i32_0 : i32, i32
  }
  func.func @transform_4(%arg0: i32) -> (i32, i32) {
    %c0_i32 = arith.constant 0 : i32
    %c0_i32_0 = arith.constant 0 : i32
    %c0_i32_1 = arith.constant 0 : i32
    return %c0_i32, %c0_i32_0 : i32, i32
  }
  func.func @transform_5(%arg0: i32) -> (i32, i32) {
    %c0_i32 = arith.constant 0 : i32
    %c0_i32_0 = arith.constant 0 : i32
    %c0_i32_1 = arith.constant 0 : i32
    return %c0_i32, %c0_i32_0 : i32, i32
  }
  func.func @transform_6(%arg0: i32) -> (i32, i32) {
    %c0_i32 = arith.constant 0 : i32
    %c0_i32_0 = arith.constant 0 : i32
    %c0_i32_1 = arith.constant 0 : i32
    return %c0_i32, %c0_i32_0 : i32, i32
  }
  func.func @transform_7(%arg0: i32) -> (i32, i32) {
    %c0_i32 = arith.constant 0 : i32
    %c0_i32_0 = arith.constant 0 : i32
    %c0_i32_1 = arith.constant 0 : i32
    return %c0_i32, %c0_i32_0 : i32, i32
  }
  func.func @transform_8(%arg0: i32) -> (i32, i32) {
    %c0_i32 = arith.constant 0 : i32
    %c0_i32_0 = arith.constant 0 : i32
    %c0_i32_1 = arith.constant 0 : i32
    return %c0_i32, %c0_i32_0 : i32, i32
  }
  func.func @transform_9(%arg0: i32) -> (i32, i32) {
    %c0_i32 = arith.constant 0 : i32
    %c0_i32_0 = arith.constant 0 : i32
    return %arg0, %c0_i32 : i32, i32
  }
}

</mosaic_0001>

<bundles_post_ra>
// kernel: tpu_custom_call.1
= control target key start
LH: loop header
LB: loop body
LE: loop exit
PB: predicated region body
PF: predicated region fallthrough
CT: control target
= control target key end

     0   :  { %14 = vsyncpa [#allocation3], 0  ;;  %s1178_s0 = inlined_call_operand.hbm [shape: bf16[8,128], index: 0, kind: input, shape index: {}]   ;;  %s1179_s1 = inlined_call_operand.hbm [shape: bf16[128,128], index: 1, kind: input, shape index: {}]   ;;  %s1180_s2 = inlined_call_operand.vmem [shape: f32[1,128], index: 2, kind: input, shape index: {}]   ;;  %s1181_s3 = inlined_call_operand.hbm [shape: bf16[128,128], index: 3, kind: input, shape index: {}]   ;;  %s1182_s4 = inlined_call_operand.vmem [shape: f32[1,128], index: 4, kind: input, shape index: {}]   ;;  %s1183_s5 = inlined_call_operand.hbm [shape: bf16[128,256], index: 5, kind: input, shape index: {}]   ;;  %s1184_s6 = inlined_call_operand.vmem [shape: f32[1,256], index: 6, kind: input, shape index: {}]   ;;  %s1185_s7 = inlined_call_operand.hbm [shape: bf16[256,128], index: 7, kind: input, shape index: {}]   ;;  %s1186_s8 = inlined_call_operand.vmem [shape: f32[1,128], index: 8, kind: input, shape index: {}]   ;;  %s1187_s9 = inlined_call_operand.hbm [shape: f32[8,128], index: 9, kind: output, shape index: {}]  }
   0x1   :  { %15 = vsyncpa [#allocation6], 0 }
   0x2   :  { %16 = vsyncpa [#allocation9], 0 }
   0x3   :  { %17 = vsyncpa [#allocation4], 0  ;;  %s1015_s30 = smov [#allocation5]   ;;  %s875_s13 = scalar_lea.hbm %s1179_s1, 1024 }
   0x4   :  { %s33_s10 = sshll.u32 %s1015_s30, 4  ;;  %p876_p0 = scmp.ne.s32.totalorder %s1179_s1, %s875_s13  ;;  %s34_s10 = int_to_ptr.vmem [resolvable:$true] %s33_s10 }
   0x5   :  { %p879_p1 = scmp.lt.u32.totalorder %s875_s13, %s1179_s1 }
   0x7   :  { %p881_p2 = pnand %p879_p1, %p876_p0 }
   0x9   :  { %884 = shalt.err (!%p881_p2)
}
   0xa   :  { %s885_s18 = scalar_lea.vmem %s34_s10, 1024  ;;  %p890_p4 = scmp.lt.s32.totalorder %s34_s10, %s34_s10 }
   0xb   :  { %p886_p3 = scmp.ne.s32.totalorder %s34_s10, %s885_s18  ;;  %p891_p5 = scmp.lt.s32.totalorder %s885_s18, %s885_s18 }
   0xd   :  { %p892_p6 = por %p891_p5, %p890_p4 }
   0xf   :  { %p893_p7 = pnand %p892_p6, %p886_p3 }
  0x11   :  { %896 = shalt.err (!%p893_p7)
}
  0x12   :  { %s1016_s19 = smov 64   ;;  %s1017_s20 = smov 4  }
  0x13   :  { %39 = dma.hbm_to_vmem [thread:$0]  %s1179_s1, 1024, %s34_s10, [#allocation6], %s1016_s19, %s1016_s19, %s1017_s20  }
  0x14   :  { %s1018_s23 = smov [#allocation8]   ;;  %s897_s27 = scalar_lea.hbm %s1183_s5, 2048 }
  0x15   :  { %s61_s24 = sshll.u32 %s1018_s23, 4  ;;  %p898_p8 = scmp.ne.s32.totalorder %s1183_s5, %s897_s27  ;;  %s62_s24 = int_to_ptr.vmem [resolvable:$true] %s61_s24 }
  0x16   :  { %p901_p9 = scmp.lt.u32.totalorder %s897_s27, %s1183_s5 }
  0x18   :  { %p903_p10 = pnand %p901_p9, %p898_p8 }
  0x1a   :  { %906 = shalt.err (!%p903_p10)
}
  0x1b   :  { %s907_s12 = scalar_lea.vmem %s62_s24, 2048  ;;  %p912_p12 = scmp.lt.s32.totalorder %s62_s24, %s62_s24 }
  0x1c   :  { %p908_p11 = scmp.ne.s32.totalorder %s62_s24, %s907_s12  ;;  %p913_p13 = scmp.lt.s32.totalorder %s907_s12, %s907_s12 }
  0x1e   :  { %p914_p0 = por %p913_p13, %p912_p12 }
  0x20   :  { %p915_p1 = pnand %p914_p0, %p908_p11 }
  0x22   :  { %918 = shalt.err (!%p915_p1)
}
  0x23   :  { %s1019_s1 = smov 128   ;;  %s1020_s10 = smov 8  }
  0x24   :  { %67 = dma.hbm_to_vmem [thread:$0]  %s1183_s5, 2048, %s62_s24, [#allocation9], %s1019_s1, %s1019_s1, %s1020_s10  }
  0x25   :  { %s1021_s15 = smov [#allocation2]   ;;  %s1022_s17 = smov [#allocation7]  }
  0x26   :  { %s24_s16 = sshll.u32 %s1021_s15, 4  ;;  %s47_s18 = sshll.u32 %s1022_s17, 4  ;;  %s25_s16 = int_to_ptr.vmem [resolvable:$true] %s24_s16  ;;  %s1105_s18 = int_to_ptr.vmem [resolvable:$true] %s47_s18 }
  0x27   :  { %s919_s23 = scalar_lea.hbm %s1178_s0, 64 }
  0x28   :  { %p920_p2 = scmp.ne.s32.totalorder %s1178_s0, %s919_s23  ;;  %p923_p3 = scmp.lt.u32.totalorder %s919_s23, %s1178_s0 }
  0x2a   :  { %p925_p4 = pnand %p923_p3, %p920_p2 }
  0x2c   :  { %928 = shalt.err (!%p925_p4)
}
  0x2d   :  { %s929_s5 = scalar_lea.vmem %s25_s16, 64  ;;  %p934_p6 = scmp.lt.s32.totalorder %s25_s16, %s25_s16 }
  0x2e   :  { %p930_p5 = scmp.ne.s32.totalorder %s25_s16, %s929_s5  ;;  %p935_p7 = scmp.lt.s32.totalorder %s929_s5, %s929_s5 }
  0x30   :  { %p936_p8 = por %p935_p7, %p934_p6 }
  0x32   :  { %p937_p9 = pnand %p936_p8, %p930_p5 }
  0x34   :  { %940 = shalt.err (!%p937_p9)
}
  0x35   :  { %27 = dma.hbm_to_vmem [thread:$0]  %s1178_s0, 64, %s25_s16, [#allocation3]  }
  0x36   :  { %s941_s12 = scalar_lea.hbm %s1181_s3, 1024 }
  0x37   :  { %p942_p10 = scmp.ne.s32.totalorder %s1181_s3, %s941_s12  ;;  %p945_p11 = scmp.lt.u32.totalorder %s941_s12, %s1181_s3 }
  0x39   :  { %p947_p12 = pnand %p945_p11, %p942_p10 }
  0x3b   :  { %950 = shalt.err (!%p947_p12)
}
  0x3c   :  { %s951_s15 = scalar_lea.vmem %s1105_s18, 1024  ;;  %p956_p0 = scmp.lt.s32.totalorder %s1105_s18, %s1105_s18 }
  0x3d   :  { %p952_p13 = scmp.ne.s32.totalorder %s1105_s18, %s951_s15  ;;  %p957_p1 = scmp.lt.s32.totalorder %s951_s15, %s951_s15 }
  0x3f   :  { %p958_p2 = por %p957_p1, %p956_p0 }
  0x41   :  { %p959_p3 = pnand %p958_p2, %p952_p13 }
  0x43   :  { %962 = shalt.err (!%p959_p3)
}
  0x44   :  { %53 = dma.hbm_to_vmem [thread:$0]  %s1181_s3, 1024, %s1105_s18, [#allocation6], %s1016_s19, %s1016_s19, %s1017_s20  }
  0x45   :  { %s1023_s17 = smov [#allocation10]   ;;  %s963_s25 = scalar_lea.hbm %s1185_s7, 2048 }
  0x46   :  { %s75_s21 = sshll.u32 %s1023_s17, 4  ;;  %p964_p4 = scmp.ne.s32.totalorder %s1185_s7, %s963_s25  ;;  %s76_s21 = int_to_ptr.vmem [resolvable:$true] %s75_s21 }
  0x47   :  { %p967_p5 = scmp.lt.u32.totalorder %s963_s25, %s1185_s7 }
  0x49   :  { %p969_p6 = pnand %p967_p5, %p964_p4 }
  0x4b   :  { %972 = shalt.err (!%p969_p6)
}
  0x4c   :  { %s973_s24 = scalar_lea.vmem %s76_s21, 2048  ;;  %p978_p8 = scmp.lt.s32.totalorder %s76_s21, %s76_s21 }
  0x4d   :  { %p974_p7 = scmp.ne.s32.totalorder %s76_s21, %s973_s24  ;;  %p979_p9 = scmp.lt.s32.totalorder %s973_s24, %s973_s24 }
  0x4f   :  { %p980_p10 = por %p979_p9, %p978_p8 }
  0x51   :  { %p981_p11 = pnand %p980_p10, %p974_p7 }
  0x53   :  { %984 = shalt.err (!%p981_p11)
}
  0x54   :  { %81 = dma.hbm_to_vmem [thread:$0]  %s1185_s7, 2048, %s76_s21, [#allocation9], %s1016_s19, %s1016_s19, %s1017_s20  }
  0x55   :  { %1007 = dma.done.wait [#allocation3], 64  }
  0x56   :  { %1008 = vsyncadd [#allocation3], 4294967232 }
  0x57   :  { %1009 = dma.done.wait [#allocation6], 2048  }
  0x58   :  { %1010 = vsyncadd [#allocation6], 4294965248 }
  0x59   :  { %1011 = dma.done.wait [#allocation9], 4096  }
  0x5a   :  { %1012 = vsyncadd [#allocation9], 4294963200  ;;  %v1024_v0 = vmov 0.0   ;;  %vm1025_vm0 = vmmov 0   ;;  %v819_v1 = vld [vmem:[#allocation5] sm:$0xff]   ;;  %v820_v2 = vld [vmem:[#allocation5 + $0x8] sm:$0xff]  }
  0x5b   :  { %766 = vmatprep.subr.bf16.mxu0 %v1024_v0  ;;  %782 = vmatprep.mubr.msk.bf16.mxu0 %vm1025_vm0, %v1024_v0  ;;  %v821_v3 = vld [vmem:[#allocation5 + $0x10] sm:$0xff]   ;;  %v827_v4 = vld [vmem:[#allocation7] sm:$0xff]   ;;  %v822_v5 = vld [vmem:[#allocation5 + $0x18] sm:$0xff]   ;;  %v1026_v41 = vmov 0   ;;  %s1027_s11 = smov [#allocation11]  }
  0x5c   :  { %786 = vmatprep.subr.bf16.mxu1 %v1024_v0  ;;  %802 = vmatprep.mubr.msk.bf16.mxu1 %vm1025_vm0, %v1024_v0  ;;  %v828_v6 = vld [vmem:[#allocation7 + $0x8] sm:$0xff]   ;;  %v823_v7 = vld [vmem:[#allocation5 + $0x20] sm:$0xff]   ;;  %v829_v8 = vld [vmem:[#allocation7 + $0x10] sm:$0xff]   ;;  %s664_s12 = sshll.u32 %s1027_s11, 4  ;;  %s665_s12 = int_to_ptr.vmem [resolvable:$true] %s664_s12 }
  0x5d   :  { %767 = vmatpush3.bf16.msra.mxu0 %v819_v1  ;;  %787 = vmatpush3.bf16.msra.mxu1 %v827_v4  ;;  %v824_v9 = vld [vmem:[#allocation5 + $0x28] sm:$0xff]   ;;  %v830_v10 = vld [vmem:[#allocation7 + $0x18] sm:$0xff]   ;;  %v825_v11 = vld [vmem:[#allocation5 + $0x30] sm:$0xff]   ;;  %s985_s1 = scalar_lea.vmem %s665_s12, 128  ;;  %p990_p13 = scmp.lt.s32.totalorder %s665_s12, %s665_s12 }
  0x5e   :  { %768 = vmatprep.subr.bf16.mxu0 %v1024_v0  ;;  %788 = vmatprep.subr.bf16.mxu1 %v1024_v0  ;;  %v831_v12 = vld [vmem:[#allocation7 + $0x20] sm:$0xff]   ;;  %v826_v13 = vld [vmem:[#allocation5 + $0x38] sm:$0xff]   ;;  %v832_v14 = vld [vmem:[#allocation7 + $0x28] sm:$0xff]   ;;  %p986_p12 = scmp.ne.s32.totalorder %s665_s12, %s985_s1  ;;  %p991_p0 = scmp.lt.s32.totalorder %s985_s1, %s985_s1 }
  0x5f   :  { %v100_v15 = vld [vmem:[#allocation2] sm:$0xf]  ;;  %v833_v16 = vld [vmem:[#allocation7 + $0x30] sm:$0xff]   ;;  %v835_v18 = vld [vmem:[#allocation8] ss:$8 sps:$4 sm:$0xff]  }
  0x60   :  { %v834_v17 = vld [vmem:[#allocation7 + $0x38] sm:$0xff]   ;;  %v837_v19 = vld [vmem:[#allocation8 + $0x4] ss:$8 sps:$4 sm:$0xff]   ;;  %v841_v23 = vld [vmem:[#allocation8 + $0x20] ss:$8 sps:$4 sm:$0xff]   ;;  %p992_p1 = por %p991_p0, %p990_p13 }
  0x61   :  { %769 = vmatpush3.bf16.msra.mxu0 %v820_v2  ;;  %789 = vmatpush3.bf16.msra.mxu1 %v828_v6  ;;  %v840_v20 = vld [vmem:[#allocation8 + $0x14] ss:$8 sps:$4 sm:$0xff]   ;;  %v838_v21 = vld [vmem:[#allocation8 + $0x10] ss:$8 sps:$4 sm:$0xff]   ;;  %v843_v22 = vld [vmem:[#allocation8 + $0x24] ss:$8 sps:$4 sm:$0xff]  }
  0x62   :  { %770 = vmatprep.subr.bf16.mxu0 %v1024_v0  ;;  %790 = vmatprep.subr.bf16.mxu1 %v1024_v0  ;;  %v846_v24 = vld [vmem:[#allocation8 + $0x34] ss:$8 sps:$4 sm:$0xff]   ;;  %v844_v25 = vld [vmem:[#allocation8 + $0x30] ss:$8 sps:$4 sm:$0xff]   ;;  %v849_v26 = vld [vmem:[#allocation8 + $0x44] ss:$8 sps:$4 sm:$0xff]   ;;  %p993_p2 = pnand %p992_p1, %p986_p12 }
  0x63   :  { %v847_v27 = vld [vmem:[#allocation8 + $0x40] ss:$8 sps:$4 sm:$0xff]   ;;  %v852_v28 = vld [vmem:[#allocation8 + $0x54] ss:$8 sps:$4 sm:$0xff]   ;;  %v850_v29 = vld [vmem:[#allocation8 + $0x50] ss:$8 sps:$4 sm:$0xff]  }
  0x64   :  { %v675_v30 = vld [vmem:[%s1180_s2] ss:$0 sm:$0xff]  ;;  %v855_v37 = vld [vmem:[#allocation8 + $0x64] ss:$8 sps:$4 sm:$0xff]   ;;  %v853_v38 = vld [vmem:[#allocation8 + $0x60] ss:$8 sps:$4 sm:$0xff]  }
  0x65   :  { %771 = vmatpush3.bf16.msra.mxu0 %v821_v3  ;;  %791 = vmatpush3.bf16.msra.mxu1 %v829_v8  ;;  %v858_v39 = vld [vmem:[#allocation8 + $0x74] ss:$8 sps:$4 sm:$0xff]   ;;  %v856_v40 = vld [vmem:[#allocation8 + $0x70] ss:$8 sps:$4 sm:$0xff]   ;;  %v859_v42 = vld [vmem:[#allocation10 + $0x40] sm:$0xff]   ;;  %v345_v3 = vlaneseq }
  0x66   :  { %772 = vmatprep.subr.bf16.mxu0 %v1024_v0  ;;  %792 = vmatprep.subr.bf16.mxu1 %v1024_v0  ;;  %v860_v43 = vld [vmem:[#allocation10] sm:$0xff]   ;;  %v861_v44 = vld [vmem:[#allocation10 + $0x48] sm:$0xff]   ;;  %v863_v46 = vld [vmem:[#allocation10 + $0x50] sm:$0xff]  }
  0x67   :  { %v862_v45 = vld [vmem:[#allocation10 + $0x8] sm:$0xff]   ;;  %v864_v47 = vld [vmem:[#allocation10 + $0x10] sm:$0xff]   ;;  %v865_v48 = vld [vmem:[#allocation10 + $0x58] sm:$0xff]   ;;  %v346_v4 = vshrl.u32 %v345_v3, 7 }
  0x68   :  { %v866_v49 = vld [vmem:[#allocation10 + $0x18] sm:$0xff]   ;;  %v867_v50 = vld [vmem:[#allocation10 + $0x60] sm:$0xff]   ;;  %v869_v52 = vld [vmem:[#allocation10 + $0x68] sm:$0xff]  }
  0x69   :  { %773 = vmatpush3.bf16.msra.mxu0 %v822_v5  ;;  %793 = vmatpush3.bf16.msra.mxu1 %v830_v10  ;;  %v868_v51 = vld [vmem:[#allocation10 + $0x20] sm:$0xff]   ;;  %v684_v53 = vld [vmem:[%s1182_s4] ss:$0 sm:$0xff]  ;;  %v870_v62 = vld [vmem:[#allocation10 + $0x28] sm:$0xff]   ;;  %v347_v5 = vsub.s32 0, %v346_v4 }
  0x6a   :  { %774 = vmatprep.subr.bf16.mxu0 %v1024_v0  ;;  %794 = vmatprep.subr.bf16.mxu1 %v1024_v0  ;;  %v871_v63 = vld [vmem:[#allocation10 + $0x70] sm:$0xff]   ;;  %v873_v1 = vld [vmem:[#allocation10 + $0x78] sm:$0xff]  }
  0x6b   :  { %v874_v2 = vld [vmem:[#allocation10 + $0x38] sm:$0xff]  }
  0x6c   :  { %v342_v6 = vld [vmem:[%s1184_s6] sm:$0x3] }
  0x6d   :  { %775 = vmatpush3.bf16.msra.mxu0 %v823_v7  ;;  %795 = vmatpush3.bf16.msra.mxu1 %v831_v12  ;;  %v351_v7 = vsub.s32 1, %v346_v4  ;;  %v348_v8 = vrot.slane %v342_v6, %v347_v5 }
  0x6e   :  { %776 = vmatprep.subr.bf16.mxu0 %v1024_v0  ;;  %796 = vmatprep.subr.bf16.mxu1 %v1024_v0 }
  0x71   :  { %777 = vmatpush3.bf16.msra.mxu0 %v824_v9  ;;  %797 = vmatpush3.bf16.msra.mxu1 %v832_v14  ;;  %v352_v9 = vrot.slane %v342_v6, %v351_v7 }
  0x72   :  { %778 = vmatprep.subr.bf16.mxu0 %v1024_v0  ;;  %798 = vmatprep.subr.bf16.mxu1 %v1024_v0 }
  0x75   :  { %779 = vmatpush3.bf16.msra.mxu0 %v825_v11  ;;  %799 = vmatpush3.bf16.msra.mxu1 %v833_v16 }
  0x76   :  { %780 = vmatprep.subr.bf16.mxu0 %v1024_v0  ;;  %800 = vmatprep.subr.bf16.mxu1 %v1024_v0  ;;  %v872_v0 = vld [vmem:[#allocation10 + $0x30] sm:$0xff]  }
  0x79   :  { %781 = vmatpush3.bf16.msra.mxu0 %v826_v13  ;;  %801 = vmatpush3.bf16.msra.mxu1 %v834_v17 }
  0x7a   :  { %435 = vmatprep.subr.bf16.mxu0 %v837_v19  ;;  %744 = vmatprep.subr.bf16.mxu1 %v859_v42 }
  0x7c   :  { %783 = vmatmul.mubr.bf16.vlgmr.msra.gmra.mrb[0].mxu0 %v100_v15 }
  0x7d   :  { %436 = vmatpush1.bf16.msra.mxu0 %v835_v18  ;;  %467 = vmatprep.mubr.bf16.mxu0 %v1026_v41 }
  0x7e   :  { %437 = vmatprep.subr.bf16.mxu0 %v840_v20 }
  0x81   :  { %438 = vmatpush1.bf16.msra.mxu0 %v838_v21 }
  0x82   :  { %439 = vmatprep.subr.bf16.mxu0 %v843_v22 }
  0x85   :  { %440 = vmatpush1.bf16.msra.mxu0 %v841_v23  ;;  %v709_v23 = vld [vmem:[%s1186_s8] ss:$0 sm:$0xff] }
  0x86   :  { %441 = vmatprep.subr.bf16.mxu0 %v846_v24 }
  0x89   :  { %442 = vmatpush1.bf16.msra.mxu0 %v844_v25 }
  0x8a   :  { %443 = vmatprep.subr.bf16.mxu0 %v849_v26 }
  0x8d   :  { %444 = vmatpush1.bf16.msra.mxu0 %v847_v27 }
  0x8e   :  { %445 = vmatprep.subr.bf16.mxu0 %v852_v28 }
  0x91   :  { %446 = vmatpush1.bf16.msra.mxu0 %v850_v29 }
  0x92   :  { %447 = vmatprep.subr.bf16.mxu0 %v855_v37 }
  0x95   :  { %448 = vmatpush1.bf16.msra.mxu0 %v853_v38 }
  0x96   :  { %449 = vmatprep.subr.bf16.mxu0 %v858_v39 }
  0x99   :  { %450 = vmatpush1.bf16.msra.mxu0 %v856_v40 }
 0x14f   :  { %v206_v31 = vpop.f32.mrb[0].mxu0 }
 0x150   :  { %v207_v32 = vadd.f32 %v675_v30, %v206_v31  ;;  %v784_v33 = vpop.f32.mrb[1].mxu0 }
 0x151   :  { %v209_v34 = vpop.f32.mrb[2].mxu0 }
 0x152   :  { %v229_v35 = vpack.c.bf16 %v207_v32, %v207_v32  ;;  %v785_v36 = vpop.f32.mrb[3].mxu0 }
 0x154   :  { %803 = vmatmul.mubr.bf16.vlgmr.msra.gmra.mrb[0].mxu1 %v229_v35 }
 0x155   :  { %745 = vmatpush3.bf16.msra.mxu1 %v860_v43 }
 0x156   :  { %746 = vmatprep.subr.bf16.mxu1 %v861_v44 }
 0x159   :  { %747 = vmatpush3.bf16.msra.mxu1 %v862_v45 }
 0x15a   :  { %748 = vmatprep.subr.bf16.mxu1 %v863_v46 }
 0x15d   :  { %749 = vmatpush3.bf16.msra.mxu1 %v864_v47 }
 0x15e   :  { %750 = vmatprep.subr.bf16.mxu1 %v865_v48 }
 0x161   :  { %751 = vmatpush3.bf16.msra.mxu1 %v866_v49 }
 0x162   :  { %752 = vmatprep.subr.bf16.mxu1 %v867_v50 }
 0x165   :  { %753 = vmatpush3.bf16.msra.mxu1 %v868_v51 }
 0x166   :  { %754 = vmatprep.subr.bf16.mxu1 %v869_v52 }
 0x169   :  { %755 = vmatpush3.bf16.msra.mxu1 %v870_v62 }
 0x16a   :  { %756 = vmatprep.subr.bf16.mxu1 %v871_v63 }
 0x16d   :  { %757 = vmatpush3.bf16.msra.mxu1 %v872_v0 }
 0x16e   :  { %758 = vmatprep.subr.bf16.mxu1 %v873_v1 }
 0x171   :  { %759 = vmatpush3.bf16.msra.mxu1 %v874_v2 }
 0x227   :  { %v318_v54 = vpop.f32.mrb[0].mxu1 }
 0x228   :  { %v319_v55 = vadd.f32 %v684_v53, %v318_v54  ;;  %v804_v56 = vpop.f32.mrb[1].mxu1 }
 0x229   :  { %v321_v57 = vpop.f32.mrb[2].mxu1 }
 0x22a   :  { %v324_v58 = vmul.f32 0.01, %v319_v55  ;;  %v805_v59 = vpop.f32.mrb[3].mxu1 }
 0x22c   :  { %v325_v60 = vmax.f32 %v319_v55, %v324_v58 }
 0x22e   :  { %v343_v61 = vpack.c.bf16 %v325_v60, %v325_v60 }
 0x230   :  { %468 = vmatmul.mubr.bf16.vlgmr.msra.gmra.mrb[4].mxu0 %v343_v61 }
 0x303   :  { %v469_v10 = vpop.f32.mrb[4].mxu0 }
 0x304   :  { %v470_v11 = vadd.f32 %v469_v10, %v348_v8  ;;  %v471_v12 = vpop.f32.mrb[5].mxu0 }
 0x305   :  { %v472_v13 = vadd.f32 %v471_v12, %v352_v9  ;;  %v473_v14 = vpop.f32.mrb[6].mxu0 }
 0x306   :  { %v476_v15 = vmul.f32 0.01, %v470_v11  ;;  %v474_v16 = vpop.f32.mrb[7].mxu0 }
 0x307   :  { %v477_v17 = vmul.f32 0.01, %v472_v13 }
 0x308   :  { %v478_v18 = vmax.f32 %v470_v11, %v476_v15 }
 0x309   :  { %v479_v19 = vmax.f32 %v472_v13, %v477_v17 }
 0x30a   :  { %v513_v21 = vpack.c.bf16 %v478_v18, %v478_v18 }
 0x30b   :  { %v514_v20 = vpack.c.bf16 %v479_v19, %v479_v19 }
 0x30d   :  { %649 = vmatprep.mubr.bf16.mxu1 %v514_v20 }
 0x30e   :  { %650 = vmatmul.mubr.bf16.vlgmr.msra.gmra.mrb[4].mxu1 %v513_v21 }
 0x3e1   :  { %v760_v22 = vpop.f32.mrb[4].mxu1 }
 0x3e2   :  { %v761_v24 = vpop.f32.mrb[5].mxu1 }
 0x3e3   :  { %v762_v25 = vadd.f32 %v761_v24, %v760_v22  ;;  %v763_v26 = vpop.f32.mrb[6].mxu1 }
 0x3e4   :  { %v764_v27 = vpop.f32.mrb[7].mxu1 }
 0x3e5   :  { %v652_v28 = vadd.f32 %v762_v25, %v709_v23 }
 0x3e7   :  { %657 = vst [vmem:[#allocation11] sm:$0xff] %v652_v28 }
 0x3e8   :  { %996 = shalt.err (!%p993_p2)
}
 0x3e9   :  { %s997_s8 = scalar_lea.hbm %s1187_s9, 128 }
 0x3ea   :  { %p998_p3 = scmp.ne.s32.totalorder %s1187_s9, %s997_s8  ;;  %p1001_p4 = scmp.lt.u32.totalorder %s997_s8, %s1187_s9 }
 0x3ec   :  { %p1003_p5 = pnand %p1001_p4, %p998_p3 }
 0x3ee   :  { %1006 = shalt.err (!%p1003_p5)
}
 0x3ef   :  { %667 = dma.vmem_to_hbm [thread:$0]  %s665_s12, 128, %s1187_s9, [#allocation4]  }
 0x3f0   :  { %1013 = dma.done.wait [#allocation4], 128  }
 0x3f1   :  { %1014 = vsyncadd [#allocation4], 4294967168 }
 0x3f2   :  { %671 = vsyncpa [#allocation3], 1 }
 0x3f3   :  { %672 = vsyncpa [#allocation6], 1 }
 0x3f4   :  { %673 = vsyncpa [#allocation9], 1 }
 0x3f5   :  { %674 = vsyncpa [#allocation4], 1 }

// kernel: tpu_custom_call.1
= control target key start
LH: loop header
LB: loop body
LE: loop exit
PB: predicated region body
PF: predicated region fallthrough
CT: control target
= control target key end

     0   :  { %14 = vsyncpa [#allocation3], 0  ;;  %s1178_s0 = inlined_call_operand.hbm [shape: bf16[8,128], index: 0, kind: input, shape index: {}]   ;;  %s1179_s1 = inlined_call_operand.hbm [shape: bf16[128,128], index: 1, kind: input, shape index: {}]   ;;  %s1180_s2 = inlined_call_operand.vmem [shape: f32[1,128], index: 2, kind: input, shape index: {}]   ;;  %s1181_s3 = inlined_call_operand.hbm [shape: bf16[128,128], index: 3, kind: input, shape index: {}]   ;;  %s1182_s4 = inlined_call_operand.vmem [shape: f32[1,128], index: 4, kind: input, shape index: {}]   ;;  %s1183_s5 = inlined_call_operand.hbm [shape: bf16[128,256], index: 5, kind: input, shape index: {}]   ;;  %s1184_s6 = inlined_call_operand.vmem [shape: f32[1,256], index: 6, kind: input, shape index: {}]   ;;  %s1185_s7 = inlined_call_operand.hbm [shape: bf16[256,128], index: 7, kind: input, shape index: {}]   ;;  %s1186_s8 = inlined_call_operand.vmem [shape: f32[1,128], index: 8, kind: input, shape index: {}]   ;;  %s1187_s9 = inlined_call_operand.hbm [shape: f32[8,128], index: 9, kind: output, shape index: {}]  }
   0x1   :  { %15 = vsyncpa [#allocation6], 0 }
   0x2   :  { %16 = vsyncpa [#allocation9], 0 }
   0x3   :  { %17 = vsyncpa [#allocation4], 0  ;;  %s1015_s30 = smov [#allocation5]   ;;  %s875_s13 = scalar_lea.hbm %s1179_s1, 1024 }
   0x4   :  { %s33_s10 = sshll.u32 %s1015_s30, 4  ;;  %p876_p0 = scmp.ne.s32.totalorder %s1179_s1, %s875_s13  ;;  %s34_s10 = int_to_ptr.vmem [resolvable:$true] %s33_s10 }
   0x5   :  { %p879_p1 = scmp.lt.u32.totalorder %s875_s13, %s1179_s1 }
   0x7   :  { %p881_p2 = pnand %p879_p1, %p876_p0 }
   0x9   :  { %884 = shalt.err (!%p881_p2)
}
   0xa   :  { %s885_s18 = scalar_lea.vmem %s34_s10, 1024  ;;  %p890_p4 = scmp.lt.s32.totalorder %s34_s10, %s34_s10 }
   0xb   :  { %p886_p3 = scmp.ne.s32.totalorder %s34_s10, %s885_s18  ;;  %p891_p5 = scmp.lt.s32.totalorder %s885_s18, %s885_s18 }
   0xd   :  { %p892_p6 = por %p891_p5, %p890_p4 }
   0xf   :  { %p893_p7 = pnand %p892_p6, %p886_p3 }
  0x11   :  { %896 = shalt.err (!%p893_p7)
}
  0x12   :  { %s1016_s19 = smov 64   ;;  %s1017_s20 = smov 4  }
  0x13   :  { %39 = dma.hbm_to_vmem [thread:$0]  %s1179_s1, 1024, %s34_s10, [#allocation6], %s1016_s19, %s1016_s19, %s1017_s20  }
  0x14   :  { %s1018_s23 = smov [#allocation8]   ;;  %s897_s27 = scalar_lea.hbm %s1183_s5, 2048 }
  0x15   :  { %s61_s24 = sshll.u32 %s1018_s23, 4  ;;  %p898_p8 = scmp.ne.s32.totalorder %s1183_s5, %s897_s27  ;;  %s62_s24 = int_to_ptr.vmem [resolvable:$true] %s61_s24 }
  0x16   :  { %p901_p9 = scmp.lt.u32.totalorder %s897_s27, %s1183_s5 }
  0x18   :  { %p903_p10 = pnand %p901_p9, %p898_p8 }
  0x1a   :  { %906 = shalt.err (!%p903_p10)
}
  0x1b   :  { %s907_s12 = scalar_lea.vmem %s62_s24, 2048  ;;  %p912_p12 = scmp.lt.s32.totalorder %s62_s24, %s62_s24 }
  0x1c   :  { %p908_p11 = scmp.ne.s32.totalorder %s62_s24, %s907_s12  ;;  %p913_p13 = scmp.lt.s32.totalorder %s907_s12, %s907_s12 }
  0x1e   :  { %p914_p0 = por %p913_p13, %p912_p12 }
  0x20   :  { %p915_p1 = pnand %p914_p0, %p908_p11 }
  0x22   :  { %918 = shalt.err (!%p915_p1)
}
  0x23   :  { %s1019_s1 = smov 128   ;;  %s1020_s10 = smov 8  }
  0x24   :  { %67 = dma.hbm_to_vmem [thread:$0]  %s1183_s5, 2048, %s62_s24, [#allocation9], %s1019_s1, %s1019_s1, %s1020_s10  }
  0x25   :  { %s1021_s15 = smov [#allocation2]   ;;  %s1022_s17 = smov [#allocation7]  }
  0x26   :  { %s24_s16 = sshll.u32 %s1021_s15, 4  ;;  %s47_s18 = sshll.u32 %s1022_s17, 4  ;;  %s25_s16 = int_to_ptr.vmem [resolvable:$true] %s24_s16  ;;  %s1105_s18 = int_to_ptr.vmem [resolvable:$true] %s47_s18 }
  0x27   :  { %s919_s23 = scalar_lea.hbm %s1178_s0, 64 }
  0x28   :  { %p920_p2 = scmp.ne.s32.totalorder %s1178_s0, %s919_s23  ;;  %p923_p3 = scmp.lt.u32.totalorder %s919_s23, %s1178_s0 }
  0x2a   :  { %p925_p4 = pnand %p923_p3, %p920_p2 }
  0x2c   :  { %928 = shalt.err (!%p925_p4)
}
  0x2d   :  { %s929_s5 = scalar_lea.vmem %s25_s16, 64  ;;  %p934_p6 = scmp.lt.s32.totalorder %s25_s16, %s25_s16 }
  0x2e   :  { %p930_p5 = scmp.ne.s32.totalorder %s25_s16, %s929_s5  ;;  %p935_p7 = scmp.lt.s32.totalorder %s929_s5, %s929_s5 }
  0x30   :  { %p936_p8 = por %p935_p7, %p934_p6 }
  0x32   :  { %p937_p9 = pnand %p936_p8, %p930_p5 }
  0x34   :  { %940 = shalt.err (!%p937_p9)
}
  0x35   :  { %27 = dma.hbm_to_vmem [thread:$0]  %s1178_s0, 64, %s25_s16, [#allocation3]  }
  0x36   :  { %s941_s12 = scalar_lea.hbm %s1181_s3, 1024 }
  0x37   :  { %p942_p10 = scmp.ne.s32.totalorder %s1181_s3, %s941_s12  ;;  %p945_p11 = scmp.lt.u32.totalorder %s941_s12, %s1181_s3 }
  0x39   :  { %p947_p12 = pnand %p945_p11, %p942_p10 }
  0x3b   :  { %950 = shalt.err (!%p947_p12)
}
  0x3c   :  { %s951_s15 = scalar_lea.vmem %s1105_s18, 1024  ;;  %p956_p0 = scmp.lt.s32.totalorder %s1105_s18, %s1105_s18 }
  0x3d   :  { %p952_p13 = scmp.ne.s32.totalorder %s1105_s18, %s951_s15  ;;  %p957_p1 = scmp.lt.s32.totalorder %s951_s15, %s951_s15 }
  0x3f   :  { %p958_p2 = por %p957_p1, %p956_p0 }
  0x41   :  { %p959_p3 = pnand %p958_p2, %p952_p13 }
  0x43   :  { %962 = shalt.err (!%p959_p3)
}
  0x44   :  { %53 = dma.hbm_to_vmem [thread:$0]  %s1181_s3, 1024, %s1105_s18, [#allocation6], %s1016_s19, %s1016_s19, %s1017_s20  }
  0x45   :  { %s1023_s17 = smov [#allocation10]   ;;  %s963_s25 = scalar_lea.hbm %s1185_s7, 2048 }
  0x46   :  { %s75_s21 = sshll.u32 %s1023_s17, 4  ;;  %p964_p4 = scmp.ne.s32.totalorder %s1185_s7, %s963_s25  ;;  %s76_s21 = int_to_ptr.vmem [resolvable:$true] %s75_s21 }
  0x47   :  { %p967_p5 = scmp.lt.u32.totalorder %s963_s25, %s1185_s7 }
  0x49   :  { %p969_p6 = pnand %p967_p5, %p964_p4 }
  0x4b   :  { %972 = shalt.err (!%p969_p6)
}
  0x4c   :  { %s973_s24 = scalar_lea.vmem %s76_s21, 2048  ;;  %p978_p8 = scmp.lt.s32.totalorder %s76_s21, %s76_s21 }
  0x4d   :  { %p974_p7 = scmp.ne.s32.totalorder %s76_s21, %s973_s24  ;;  %p979_p9 = scmp.lt.s32.totalorder %s973_s24, %s973_s24 }
  0x4f   :  { %p980_p10 = por %p979_p9, %p978_p8 }
  0x51   :  { %p981_p11 = pnand %p980_p10, %p974_p7 }
  0x53   :  { %984 = shalt.err (!%p981_p11)
}
  0x54   :  { %81 = dma.hbm_to_vmem [thread:$0]  %s1185_s7, 2048, %s76_s21, [#allocation9], %s1016_s19, %s1016_s19, %s1017_s20  }
  0x55   :  { %1007 = dma.done.wait [#allocation3], 64  }
  0x56   :  { %1008 = vsyncadd [#allocation3], 4294967232 }
  0x57   :  { %1009 = dma.done.wait [#allocation6], 2048  }
  0x58   :  { %1010 = vsyncadd [#allocation6], 4294965248 }
  0x59   :  { %1011 = dma.done.wait [#allocation9], 4096  }
  0x5a   :  { %1012 = vsyncadd [#allocation9], 4294963200  ;;  %v1024_v0 = vmov 0.0   ;;  %vm1025_vm0 = vmmov 0   ;;  %v819_v1 = vld [vmem:[#allocation5] sm:$0xff]   ;;  %v820_v2 = vld [vmem:[#allocation5 + $0x8] sm:$0xff]  }
  0x5b   :  { %766 = vmatprep.subr.bf16.mxu0 %v1024_v0  ;;  %782 = vmatprep.mubr.msk.bf16.mxu0 %vm1025_vm0, %v1024_v0  ;;  %v821_v3 = vld [vmem:[#allocation5 + $0x10] sm:$0xff]   ;;  %v827_v4 = vld [vmem:[#allocation7] sm:$0xff]   ;;  %v822_v5 = vld [vmem:[#allocation5 + $0x18] sm:$0xff]   ;;  %v1026_v41 = vmov 0   ;;  %s1027_s11 = smov [#allocation11]  }
  0x5c   :  { %786 = vmatprep.subr.bf16.mxu1 %v1024_v0  ;;  %802 = vmatprep.mubr.msk.bf16.mxu1 %vm1025_vm0, %v1024_v0  ;;  %v828_v6 = vld [vmem:[#allocation7 + $0x8] sm:$0xff]   ;;  %v823_v7 = vld [vmem:[#allocation5 + $0x20] sm:$0xff]   ;;  %v829_v8 = vld [vmem:[#allocation7 + $0x10] sm:$0xff]   ;;  %s664_s12 = sshll.u32 %s1027_s11, 4  ;;  %s665_s12 = int_to_ptr.vmem [resolvable:$true] %s664_s12 }
  0x5d   :  { %767 = vmatpush3.bf16.msra.mxu0 %v819_v1  ;;  %787 = vmatpush3.bf16.msra.mxu1 %v827_v4  ;;  %v824_v9 = vld [vmem:[#allocation5 + $0x28] sm:$0xff]   ;;  %v830_v10 = vld [vmem:[#allocation7 + $0x18] sm:$0xff]   ;;  %v825_v11 = vld [vmem:[#allocation5 + $0x30] sm:$0xff]   ;;  %s985_s1 = scalar_lea.vmem %s665_s12, 128  ;;  %p990_p13 = scmp.lt.s32.totalorder %s665_s12, %s665_s12 }
  0x5e   :  { %768 = vmatprep.subr.bf16.mxu0 %v1024_v0  ;;  %788 = vmatprep.subr.bf16.mxu1 %v1024_v0  ;;  %v831_v12 = vld [vmem:[#allocation7 + $0x20] sm:$0xff]   ;;  %v826_v13 = vld [vmem:[#allocation5 + $0x38] sm:$0xff]   ;;  %v832_v14 = vld [vmem:[#allocation7 + $0x28] sm:$0xff]   ;;  %p986_p12 = scmp.ne.s32.totalorder %s665_s12, %s985_s1  ;;  %p991_p0 = scmp.lt.s32.totalorder %s985_s1, %s985_s1 }
  0x5f   :  { %v100_v15 = vld [vmem:[#allocation2] sm:$0xf]  ;;  %v833_v16 = vld [vmem:[#allocation7 + $0x30] sm:$0xff]   ;;  %v835_v18 = vld [vmem:[#allocation8] ss:$8 sps:$4 sm:$0xff]  }
  0x60   :  { %v834_v17 = vld [vmem:[#allocation7 + $0x38] sm:$0xff]   ;;  %v837_v19 = vld [vmem:[#allocation8 + $0x4] ss:$8 sps:$4 sm:$0xff]   ;;  %v841_v23 = vld [vmem:[#allocation8 + $0x20] ss:$8 sps:$4 sm:$0xff]   ;;  %p992_p1 = por %p991_p0, %p990_p13 }
  0x61   :  { %769 = vmatpush3.bf16.msra.mxu0 %v820_v2  ;;  %789 = vmatpush3.bf16.msra.mxu1 %v828_v6  ;;  %v840_v20 = vld [vmem:[#allocation8 + $0x14] ss:$8 sps:$4 sm:$0xff]   ;;  %v838_v21 = vld [vmem:[#allocation8 + $0x10] ss:$8 sps:$4 sm:$0xff]   ;;  %v843_v22 = vld [vmem:[#allocation8 + $0x24] ss:$8 sps:$4 sm:$0xff]  }
  0x62   :  { %770 = vmatprep.subr.bf16.mxu0 %v1024_v0  ;;  %790 = vmatprep.subr.bf16.mxu1 %v1024_v0  ;;  %v846_v24 = vld [vmem:[#allocation8 + $0x34] ss:$8 sps:$4 sm:$0xff]   ;;  %v844_v25 = vld [vmem:[#allocation8 + $0x30] ss:$8 sps:$4 sm:$0xff]   ;;  %v849_v26 = vld [vmem:[#allocation8 + $0x44] ss:$8 sps:$4 sm:$0xff]   ;;  %p993_p2 = pnand %p992_p1, %p986_p12 }
  0x63   :  { %v847_v27 = vld [vmem:[#allocation8 + $0x40] ss:$8 sps:$4 sm:$0xff]   ;;  %v852_v28 = vld [vmem:[#allocation8 + $0x54] ss:$8 sps:$4 sm:$0xff]   ;;  %v850_v29 = vld [vmem:[#allocation8 + $0x50] ss:$8 sps:$4 sm:$0xff]  }
  0x64   :  { %v675_v30 = vld [vmem:[%s1180_s2] ss:$0 sm:$0xff]  ;;  %v855_v37 = vld [vmem:[#allocation8 + $0x64] ss:$8 sps:$4 sm:$0xff]   ;;  %v853_v38 = vld [vmem:[#allocation8 + $0x60] ss:$8 sps:$4 sm:$0xff]  }
  0x65   :  { %771 = vmatpush3.bf16.msra.mxu0 %v821_v3  ;;  %791 = vmatpush3.bf16.msra.mxu1 %v829_v8  ;;  %v858_v39 = vld [vmem:[#allocation8 + $0x74] ss:$8 sps:$4 sm:$0xff]   ;;  %v856_v40 = vld [vmem:[#allocation8 + $0x70] ss:$8 sps:$4 sm:$0xff]   ;;  %v859_v42 = vld [vmem:[#allocation10 + $0x40] sm:$0xff]   ;;  %v345_v3 = vlaneseq }
  0x66   :  { %772 = vmatprep.subr.bf16.mxu0 %v1024_v0  ;;  %792 = vmatprep.subr.bf16.mxu1 %v1024_v0  ;;  %v860_v43 = vld [vmem:[#allocation10] sm:$0xff]   ;;  %v861_v44 = vld [vmem:[#allocation10 + $0x48] sm:$0xff]   ;;  %v863_v46 = vld [vmem:[#allocation10 + $0x50] sm:$0xff]  }
  0x67   :  { %v862_v45 = vld [vmem:[#allocation10 + $0x8] sm:$0xff]   ;;  %v864_v47 = vld [vmem:[#allocation10 + $0x10] sm:$0xff]   ;;  %v865_v48 = vld [vmem:[#allocation10 + $0x58] sm:$0xff]   ;;  %v346_v4 = vshrl.u32 %v345_v3, 7 }
  0x68   :  { %v866_v49 = vld [vmem:[#allocation10 + $0x18] sm:$0xff]   ;;  %v867_v50 = vld [vmem:[#allocation10 + $0x60] sm:$0xff]   ;;  %v869_v52 = vld [vmem:[#allocation10 + $0x68] sm:$0xff]  }
  0x69   :  { %773 = vmatpush3.bf16.msra.mxu0 %v822_v5  ;;  %793 = vmatpush3.bf16.msra.mxu1 %v830_v10  ;;  %v868_v51 = vld [vmem:[#allocation10 + $0x20] sm:$0xff]   ;;  %v684_v53 = vld [vmem:[%s1182_s4] ss:$0 sm:$0xff]  ;;  %v870_v62 = vld [vmem:[#allocation10 + $0x28] sm:$0xff]   ;;  %v347_v5 = vsub.s32 0, %v346_v4 }
  0x6a   :  { %774 = vmatprep.subr.bf16.mxu0 %v1024_v0  ;;  %794 = vmatprep.subr.bf16.mxu1 %v1024_v0  ;;  %v871_v63 = vld [vmem:[#allocation10 + $0x70] sm:$0xff]   ;;  %v873_v1 = vld [vmem:[#allocation10 + $0x78] sm:$0xff]  }
  0x6b   :  { %v874_v2 = vld [vmem:[#allocation10 + $0x38] sm:$0xff]  }
  0x6c   :  { %v342_v6 = vld [vmem:[%s1184_s6] sm:$0x3] }
  0x6d   :  { %775 = vmatpush3.bf16.msra.mxu0 %v823_v7  ;;  %795 = vmatpush3.bf16.msra.mxu1 %v831_v12  ;;  %v351_v7 = vsub.s32 1, %v346_v4  ;;  %v348_v8 = vrot.slane %v342_v6, %v347_v5 }
  0x6e   :  { %776 = vmatprep.subr.bf16.mxu0 %v1024_v0  ;;  %796 = vmatprep.subr.bf16.mxu1 %v1024_v0 }
  0x71   :  { %777 = vmatpush3.bf16.msra.mxu0 %v824_v9  ;;  %797 = vmatpush3.bf16.msra.mxu1 %v832_v14  ;;  %v352_v9 = vrot.slane %v342_v6, %v351_v7 }
  0x72   :  { %778 = vmatprep.subr.bf16.mxu0 %v1024_v0  ;;  %798 = vmatprep.subr.bf16.mxu1 %v1024_v0 }
  0x75   :  { %779 = vmatpush3.bf16.msra.mxu0 %v825_v11  ;;  %799 = vmatpush3.bf16.msra.mxu1 %v833_v16 }
  0x76   :  { %780 = vmatprep.subr.bf16.mxu0 %v1024_v0  ;;  %800 = vmatprep.subr.bf16.mxu1 %v1024_v0  ;;  %v872_v0 = vld [vmem:[#allocation10 + $0x30] sm:$0xff]  }
  0x79   :  { %781 = vmatpush3.bf16.msra.mxu0 %v826_v13  ;;  %801 = vmatpush3.bf16.msra.mxu1 %v834_v17 }
  0x7a   :  { %435 = vmatprep.subr.bf16.mxu0 %v837_v19  ;;  %744 = vmatprep.subr.bf16.mxu1 %v859_v42 }
  0x7c   :  { %783 = vmatmul.mubr.bf16.vlgmr.msra.gmra.mrb[0].mxu0 %v100_v15 }
  0x7d   :  { %436 = vmatpush1.bf16.msra.mxu0 %v835_v18  ;;  %467 = vmatprep.mubr.bf16.mxu0 %v1026_v41 }
  0x7e   :  { %437 = vmatprep.subr.bf16.mxu0 %v840_v20 }
  0x81   :  { %438 = vmatpush1.bf16.msra.mxu0 %v838_v21 }
  0x82   :  { %439 = vmatprep.subr.bf16.mxu0 %v843_v22 }
  0x85   :  { %440 = vmatpush1.bf16.msra.mxu0 %v841_v23  ;;  %v709_v23 = vld [vmem:[%s1186_s8] ss:$0 sm:$0xff] }
  0x86   :  { %441 = vmatprep.subr.bf16.mxu0 %v846_v24 }
  0x89   :  { %442 = vmatpush1.bf16.msra.mxu0 %v844_v25 }
  0x8a   :  { %443 = vmatprep.subr.bf16.mxu0 %v849_v26 }
  0x8d   :  { %444 = vmatpush1.bf16.msra.mxu0 %v847_v27 }
  0x8e   :  { %445 = vmatprep.subr.bf16.mxu0 %v852_v28 }
  0x91   :  { %446 = vmatpush1.bf16.msra.mxu0 %v850_v29 }
  0x92   :  { %447 = vmatprep.subr.bf16.mxu0 %v855_v37 }
  0x95   :  { %448 = vmatpush1.bf16.msra.mxu0 %v853_v38 }
  0x96   :  { %449 = vmatprep.subr.bf16.mxu0 %v858_v39 }
  0x99   :  { %450 = vmatpush1.bf16.msra.mxu0 %v856_v40 }
 0x14f   :  { %v206_v31 = vpop.f32.mrb[0].mxu0 }
 0x150   :  { %v207_v32 = vadd.f32 %v675_v30, %v206_v31  ;;  %v784_v33 = vpop.f32.mrb[1].mxu0 }
 0x151   :  { %v209_v34 = vpop.f32.mrb[2].mxu0 }
 0x152   :  { %v229_v35 = vpack.c.bf16 %v207_v32, %v207_v32  ;;  %v785_v36 = vpop.f32.mrb[3].mxu0 }
 0x154   :  { %803 = vmatmul.mubr.bf16.vlgmr.msra.gmra.mrb[0].mxu1 %v229_v35 }
 0x155   :  { %745 = vmatpush3.bf16.msra.mxu1 %v860_v43 }
 0x156   :  { %746 = vmatprep.subr.bf16.mxu1 %v861_v44 }
 0x159   :  { %747 = vmatpush3.bf16.msra.mxu1 %v862_v45 }
 0x15a   :  { %748 = vmatprep.subr.bf16.mxu1 %v863_v46 }
 0x15d   :  { %749 = vmatpush3.bf16.msra.mxu1 %v864_v47 }
 0x15e   :  { %750 = vmatprep.subr.bf16.mxu1 %v865_v48 }
 0x161   :  { %751 = vmatpush3.bf16.msra.mxu1 %v866_v49 }
 0x162   :  { %752 = vmatprep.subr.bf16.mxu1 %v867_v50 }
 0x165   :  { %753 = vmatpush3.bf16.msra.mxu1 %v868_v51 }
 0x166   :  { %754 = vmatprep.subr.bf16.mxu1 %v869_v52 }
 0x169   :  { %755 = vmatpush3.bf16.msra.mxu1 %v870_v62 }
 0x16a   :  { %756 = vmatprep.subr.bf16.mxu1 %v871_v63 }
 0x16d   :  { %757 = vmatpush3.bf16.msra.mxu1 %v872_v0 }
 0x16e   :  { %758 = vmatprep.subr.bf16.mxu1 %v873_v1 }
 0x171   :  { %759 = vmatpush3.bf16.msra.mxu1 %v874_v2 }
 0x227   :  { %v318_v54 = vpop.f32.mrb[0].mxu1 }
 0x228   :  { %v319_v55 = vadd.f32 %v684_v53, %v318_v54  ;;  %v804_v56 = vpop.f32.mrb[1].mxu1 }
 0x229   :  { %v321_v57 = vpop.f32.mrb[2].mxu1 }
 0x22a   :  { %v324_v58 = vmul.f32 0.01, %v319_v55  ;;  %v805_v59 = vpop.f32.mrb[3].mxu1 }
 0x22c   :  { %v325_v60 = vmax.f32 %v319_v55, %v324_v58 }
 0x22e   :  { %v343_v61 = vpack.c.bf16 %v325_v60, %v325_v60 }
 0x230   :  { %468 = vmatmul.mubr.bf16.vlgmr.msra.gmra.mrb[4].mxu0 %v343_v61 }
 0x303   :  { %v469_v10 = vpop.f32.mrb[4].mxu0 }
 0x304   :  { %v470_v11 = vadd.f32 %v469_v10, %v348_v8  ;;  %v471_v12 = vpop.f32.mrb[5].mxu0 }
 0x305   :  { %v472_v13 = vadd.f32 %v471_v12, %v352_v9  ;;  %v473_v14 = vpop.f32.mrb[6].mxu0 }
 0x306   :  { %v476_v15 = vmul.f32 0.01, %v470_v11  ;;  %v474_v16 = vpop.f32.mrb[7].mxu0 }
 0x307   :  { %v477_v17 = vmul.f32 0.01, %v472_v13 }
 0x308   :  { %v478_v18 = vmax.f32 %v470_v11, %v476_v15 }
 0x309   :  { %v479_v19 = vmax.f32 %v472_v13, %v477_v17 }
 0x30a   :  { %v513_v21 = vpack.c.bf16 %v478_v18, %v478_v18 }
 0x30b   :  { %v514_v20 = vpack.c.bf16 %v479_v19, %v479_v19 }
 0x30d   :  { %649 = vmatprep.mubr.bf16.mxu1 %v514_v20 }
 0x30e   :  { %650 = vmatmul.mubr.bf16.vlgmr.msra.gmra.mrb[4].mxu1 %v513_v21 }
 0x3e1   :  { %v760_v22 = vpop.f32.mrb[4].mxu1 }
 0x3e2   :  { %v761_v24 = vpop.f32.mrb[5].mxu1 }
 0x3e3   :  { %v762_v25 = vadd.f32 %v761_v24, %v760_v22  ;;  %v763_v26 = vpop.f32.mrb[6].mxu1 }
 0x3e4   :  { %v764_v27 = vpop.f32.mrb[7].mxu1 }
 0x3e5   :  { %v652_v28 = vadd.f32 %v762_v25, %v709_v23 }
 0x3e7   :  { %657 = vst [vmem:[#allocation11] sm:$0xff] %v652_v28 }
 0x3e8   :  { %996 = shalt.err (!%p993_p2)
}
 0x3e9   :  { %s997_s8 = scalar_lea.hbm %s1187_s9, 128 }
 0x3ea   :  { %p998_p3 = scmp.ne.s32.totalorder %s1187_s9, %s997_s8  ;;  %p1001_p4 = scmp.lt.u32.totalorder %s997_s8, %s1187_s9 }
 0x3ec   :  { %p1003_p5 = pnand %p1001_p4, %p998_p3 }
 0x3ee   :  { %1006 = shalt.err (!%p1003_p5)
}
 0x3ef   :  { %667 = dma.vmem_to_hbm [thread:$0]  %s665_s12, 128, %s1187_s9, [#allocation4]  }
 0x3f0   :  { %1013 = dma.done.wait [#allocation4], 128  }
 0x3f1   :  { %1014 = vsyncadd [#allocation4], 4294967168 }
 0x3f2   :  { %671 = vsyncpa [#allocation3], 1 }
 0x3f3   :  { %672 = vsyncpa [#allocation6], 1 }
 0x3f4   :  { %673 = vsyncpa [#allocation9], 1 }
 0x3f5   :  { %674 = vsyncpa [#allocation4], 1 }

</bundles_post_ra>
